<compile_context>
chip_gen: v5e
topology: v5e:2x2
jax: 0.10.0
libtpu: 0.0.40
codegen_flags: <defaults>
</compile_context>

<pallas_src>
import functools
import math

import jax
import jax.numpy as jnp
from jax.experimental import pallas as pl
from jax.experimental.pallas import tpu as pltpu

V_TH = 1.0
LEAK = 0.25
_THRESH = 0.5 * V_TH  # spike iff mem / v_th > 0.5  <=>  mem > 0.5 * v_th


def _lif_kernel(x_ref, out_ref, mem_ref, *, t_chunk):
    t = pl.program_id(1)  # time-chunk index (innermost, sequential)

    @pl.when(t == 0)
    def _():
        mem_ref[...] = jnp.zeros_like(mem_ref)

    mem = mem_ref[...]
    for i in range(t_chunk):  # static unroll over the time chunk
        mem = LEAK * mem + x_ref[i].astype(jnp.float32)
        fired = mem > _THRESH                      # single compare, shared
        out_ref[i] = jnp.where(fired, 1.0, 0.0).astype(out_ref.dtype)
        mem = jnp.where(fired, 0.0, mem)           # == mem * (1 - spike)
    mem_ref[...] = mem


def _largest_divisor_leq(n, cap):
    d = min(n, cap)
    while n % d != 0:
        d -= 1
    return d


def _pick_lane_width(n):
    # Largest lane width (multiple of 128, up to 1024) minimizing zero padding
    # once n is rounded up to a multiple of 8 * lane.
    best = None
    for lane in (1024, 512, 256, 128):
        padded = ((n + 8 * lane - 1) // (8 * lane)) * (8 * lane)
        waste = padded - n
        if best is None or waste < best[1]:
            best = (lane, waste)
    return best[0]


def dct_spatial_lif_forward(x, *, max_t_chunk=8):
    """x: [T, B, C, H, W] -> float32 spikes of the same shape."""
    T = x.shape[0]
    per_step_shape = x.shape[1:]
    N = math.prod(per_step_shape)

    # TODO(synk): apply the DCTSA transform here once its definition is available.

    # Lane-dense re-flattening, decoupled from H*W.
    L = _pick_lane_width(N)
    rows = ((N + 8 * L - 1) // (8 * L)) * 8        # rows per timestep, multiple of 8
    n_pad = rows * L - N
    xf = x.reshape(T, N)
    if n_pad:
        xf = jnp.pad(xf, ((0, 0), (0, n_pad)))     # zero padding never spikes
    xf = xf.reshape(T, rows, L)

    # Time chunking (amortize per-grid-step overhead).
    t_chunk = _largest_divisor_leq(T, max_t_chunk)

    # Row tiling: keep 2x input + 2x output buffers + mem scratch within ~32 MiB.
    target_bytes = 32 << 20
    bytes_per_row = L * 4
    max_tm = max(8, (target_bytes // ((4 * t_chunk + 1) * bytes_per_row)) // 8 * 8)
    tm = min(max_tm, rows)
    while rows % tm:
        tm -= 8

    vmem_needed = (4 * t_chunk + 1) * tm * bytes_per_row
    vmem_limit = int(min(vmem_needed + (8 << 20), 48 << 20))

    out = pl.pallas_call(
        functools.partial(_lif_kernel, t_chunk=t_chunk),
        out_shape=jax.ShapeDtypeStruct((T, rows, L), jnp.float32),
        grid_spec=pltpu.PrefetchScalarGridSpec(
            num_scalar_prefetch=0,
            grid=(rows // tm, T // t_chunk),        # (row tiles, time chunks)
            in_specs=[pl.BlockSpec((t_chunk, tm, L), lambda m, t: (t, m, 0))],
            out_specs=pl.BlockSpec((t_chunk, tm, L), lambda m, t: (t, m, 0)),
            scratch_shapes=[pltpu.VMEM((tm, L), jnp.float32)],  # membrane state
        ),
        compiler_params=pltpu.CompilerParams(
            dimension_semantics=("parallel", "arbitrary"),
            vmem_limit_bytes=vmem_limit,
        ),
    )(xf)

    out = out.reshape(T, rows * L)[:, :N]
    return out.reshape((T,) + per_step_shape)


def _reference(x):
    # Pure-JAX mirror of the PyTorch forward (DCTSA as identity).
    T = x.shape[0]
    xf = x.astype(jnp.float32)
    mem = jnp.zeros_like(xf[0])
    outs = []
    for i in range(T):
        mem = LEAK * mem + xf[i]
        spike = (mem / V_TH > 0.5).astype(jnp.float32)
        mem = mem * (1.0 - spike)
        outs.append(spike)
    return jnp.stack(outs)


if __name__ == "__main__":
    step, B, C, H, W = 8, 2, 4, 16, 16
    key = jax.random.PRNGKey(0)
    x = jax.random.normal(key, (step, B, C, H, W), dtype=jnp.float32)

    out = dct_spatial_lif_forward(x)
    out = jax.block_until_ready(out)

    ref = _reference(x)
    assert out.shape == (step, B, C, H, W)
    assert jnp.allclose(out, ref), "Pallas kernel mismatch vs reference"

    print("KERNEL_OK")
</pallas_src>

<mosaic_0001>
module attributes {stable_mosaic.version = 11 : i64} {
  func.func @_lif_kernel(%arg0: i32, %arg1: i32, %arg2: memref<8x8x256xf32, #tpu.memory_space<vmem>>, %arg3: memref<8x8x256xf32, #tpu.memory_space<vmem>>, %arg4: memref<8x256xf32, #tpu.memory_space<vmem>>) attributes {dimension_semantics = [#tpu.dimension_semantics<parallel>, #tpu.dimension_semantics<arbitrary>], iteration_bounds = array<i64: 1, 1>, scalar_prefetch = 0 : i64, scratch_operands = 1 : i64, tpu.core_type = #tpu.core_type<tc>, window_params = [{transform_indices = @transform_0, window_bounds = array<i64: 8, 8, 256>}, {transform_indices = @transform_1, window_bounds = array<i64: 8, 8, 256>}]} {
    %c0_i32 = arith.constant 0 : i32
    %0 = arith.cmpi eq, %arg1, %c0_i32 : i32
    %1 = arith.extui %0 : i1 to i32
    %c0_i32_0 = arith.constant 0 : i32
    %2 = arith.cmpi ne, %1, %c0_i32_0 : i32
    scf.if %2 {
      %cst_84 = arith.constant 0.000000e+00 : f32
      %125 = vector.broadcast %cst_84 : f32 to vector<8x256xf32>
      %c0_85 = arith.constant 0 : index
      %c0_86 = arith.constant 0 : index
      %126 = vector.load %arg4[%c0_85, %c0_86] : memref<8x256xf32, #tpu.memory_space<vmem>>, vector<8x256xf32>
      tpu.vector_store %arg4[%c0_85, %c0_86], %125 {strides = array<i32>} : memref<8x256xf32, #tpu.memory_space<vmem>>, vector<8x256xf32>,
    } else {
    }
    %c0 = arith.constant 0 : index
    %c0_1 = arith.constant 0 : index
    %3 = vector.load %arg4[%c0, %c0_1] : memref<8x256xf32, #tpu.memory_space<vmem>>, vector<8x256xf32>
    %cst = arith.constant 2.500000e-01 : f32
    %4 = vector.broadcast %cst : f32 to vector<8x256xf32>
    %5 = arith.mulf %4, %3 : vector<8x256xf32>
    %c0_2 = arith.constant 0 : index
    %c0_3 = arith.constant 0 : index
    %c0_4 = arith.constant 0 : index
    %6 = vector.load %arg2[%c0_2, %c0_3, %c0_4] : memref<8x8x256xf32, #tpu.memory_space<vmem>>, vector<1x8x256xf32>
    %7 = vector.shape_cast %6 : vector<1x8x256xf32> to vector<8x256xf32>
    %8 = arith.addf %5, %7 : vector<8x256xf32>
    %cst_5 = arith.constant 5.000000e-01 : f32
    %9 = vector.broadcast %cst_5 : f32 to vector<8x256xf32>
    %10 = arith.cmpf ogt, %8, %9 : vector<8x256xf32>
    %cst_6 = arith.constant 1.000000e+00 : f32
    %cst_7 = arith.constant 0.000000e+00 : f32
    %11 = vector.broadcast %cst_6 : f32 to vector<8x256xf32>
    %12 = vector.broadcast %cst_7 : f32 to vector<8x256xf32>
    %13 = arith.select %10, %11, %12 : vector<8x256xi1>, vector<8x256xf32>
    %c0_8 = arith.constant 0 : index
    %c0_9 = arith.constant 0 : index
    %c0_10 = arith.constant 0 : index
    %14 = vector.load %arg3[%c0_8, %c0_9, %c0_10] : memref<8x8x256xf32, #tpu.memory_space<vmem>>, vector<1x8x256xf32>
    %15 = vector.shape_cast %14 : vector<1x8x256xf32> to vector<8x256xf32>
    %16 = vector.shape_cast %13 : vector<8x256xf32> to vector<1x8x256xf32>
    tpu.vector_store %arg3[%c0_8, %c0_9, %c0_10], %16 {strides = array<i32>} : memref<8x8x256xf32, #tpu.memory_space<vmem>>, vector<1x8x256xf32>,
    %cst_11 = arith.constant 0.000000e+00 : f32
    %17 = vector.broadcast %cst_11 : f32 to vector<8x256xf32>
    %18 = arith.select %10, %17, %8 : vector<8x256xi1>, vector<8x256xf32>
    %cst_12 = arith.constant 2.500000e-01 : f32
    %19 = vector.broadcast %cst_12 : f32 to vector<8x256xf32>
    %20 = arith.mulf %19, %18 : vector<8x256xf32>
    %c1 = arith.constant 1 : index
    %c0_13 = arith.constant 0 : index
    %c0_14 = arith.constant 0 : index
    %21 = vector.load %arg2[%c1, %c0_13, %c0_14] : memref<8x8x256xf32, #tpu.memory_space<vmem>>, vector<1x8x256xf32>
    %22 = vector.shape_cast %21 : vector<1x8x256xf32> to vector<8x256xf32>
    %23 = arith.addf %20, %22 : vector<8x256xf32>
    %cst_15 = arith.constant 5.000000e-01 : f32
    %24 = vector.broadcast %cst_15 : f32 to vector<8x256xf32>
    %25 = arith.cmpf ogt, %23, %24 : vector<8x256xf32>
    %cst_16 = arith.constant 1.000000e+00 : f32
    %cst_17 = arith.constant 0.000000e+00 : f32
    %26 = vector.broadcast %cst_16 : f32 to vector<8x256xf32>
    %27 = vector.broadcast %cst_17 : f32 to vector<8x256xf32>
    %28 = arith.select %25, %26, %27 : vector<8x256xi1>, vector<8x256xf32>
    %c1_18 = arith.constant 1 : index
    %c0_19 = arith.constant 0 : index
    %c0_20 = arith.constant 0 : index
    %29 = vector.load %arg3[%c1_18, %c0_19, %c0_20] : memref<8x8x256xf32, #tpu.memory_space<vmem>>, vector<1x8x256xf32>
    %30 = vector.shape_cast %29 : vector<1x8x256xf32> to vector<8x256xf32>
    %31 = vector.shape_cast %28 : vector<8x256xf32> to vector<1x8x256xf32>
    tpu.vector_store %arg3[%c1_18, %c0_19, %c0_20], %31 {strides = array<i32>} : memref<8x8x256xf32, #tpu.memory_space<vmem>>, vector<1x8x256xf32>,
    %cst_21 = arith.constant 0.000000e+00 : f32
    %32 = vector.broadcast %cst_21 : f32 to vector<8x256xf32>
    %33 = arith.select %25, %32, %23 : vector<8x256xi1>, vector<8x256xf32>
    %cst_22 = arith.constant 2.500000e-01 : f32
    %34 = vector.broadcast %cst_22 : f32 to vector<8x256xf32>
    %35 = arith.mulf %34, %33 : vector<8x256xf32>
    %c2 = arith.constant 2 : index
    %c0_23 = arith.constant 0 : index
    %c0_24 = arith.constant 0 : index
    %36 = vector.load %arg2[%c2, %c0_23, %c0_24] : memref<8x8x256xf32, #tpu.memory_space<vmem>>, vector<1x8x256xf32>
    %37 = vector.shape_cast %36 : vector<1x8x256xf32> to vector<8x256xf32>
    %38 = arith.addf %35, %37 : vector<8x256xf32>
    %cst_25 = arith.constant 5.000000e-01 : f32
    %39 = vector.broadcast %cst_25 : f32 to vector<8x256xf32>
    %40 = arith.cmpf ogt, %38, %39 : vector<8x256xf32>
    %cst_26 = arith.constant 1.000000e+00 : f32
    %cst_27 = arith.constant 0.000000e+00 : f32
    %41 = vector.broadcast %cst_26 : f32 to vector<8x256xf32>
    %42 = vector.broadcast %cst_27 : f32 to vector<8x256xf32>
    %43 = arith.select %40, %41, %42 : vector<8x256xi1>, vector<8x256xf32>
    %c2_28 = arith.constant 2 : index
    %c0_29 = arith.constant 0 : index
    %c0_30 = arith.constant 0 : index
    %44 = vector.load %arg3[%c2_28, %c0_29, %c0_30] : memref<8x8x256xf32, #tpu.memory_space<vmem>>, vector<1x8x256xf32>
    %45 = vector.shape_cast %44 : vector<1x8x256xf32> to vector<8x256xf32>
    %46 = vector.shape_cast %43 : vector<8x256xf32> to vector<1x8x256xf32>
    tpu.vector_store %arg3[%c2_28, %c0_29, %c0_30], %46 {strides = array<i32>} : memref<8x8x256xf32, #tpu.memory_space<vmem>>, vector<1x8x256xf32>,
    %cst_31 = arith.constant 0.000000e+00 : f32
    %47 = vector.broadcast %cst_31 : f32 to vector<8x256xf32>
    %48 = arith.select %40, %47, %38 : vector<8x256xi1>, vector<8x256xf32>
    %cst_32 = arith.constant 2.500000e-01 : f32
    %49 = vector.broadcast %cst_32 : f32 to vector<8x256xf32>
    %50 = arith.mulf %49, %48 : vector<8x256xf32>
    %c3 = arith.constant 3 : index
    %c0_33 = arith.constant 0 : index
    %c0_34 = arith.constant 0 : index
    %51 = vector.load %arg2[%c3, %c0_33, %c0_34] : memref<8x8x256xf32, #tpu.memory_space<vmem>>, vector<1x8x256xf32>
    %52 = vector.shape_cast %51 : vector<1x8x256xf32> to vector<8x256xf32>
    %53 = arith.addf %50, %52 : vector<8x256xf32>
    %cst_35 = arith.constant 5.000000e-01 : f32
    %54 = vector.broadcast %cst_35 : f32 to vector<8x256xf32>
    %55 = arith.cmpf ogt, %53, %54 : vector<8x256xf32>
    %cst_36 = arith.constant 1.000000e+00 : f32
    %cst_37 = arith.constant 0.000000e+00 : f32
    %56 = vector.broadcast %cst_36 : f32 to vector<8x256xf32>
    %57 = vector.broadcast %cst_37 : f32 to vector<8x256xf32>
    %58 = arith.select %55, %56, %57 : vector<8x256xi1>, vector<8x256xf32>
    %c3_38 = arith.constant 3 : index
    %c0_39 = arith.constant 0 : index
    %c0_40 = arith.constant 0 : index
    %59 = vector.load %arg3[%c3_38, %c0_39, %c0_40] : memref<8x8x256xf32, #tpu.memory_space<vmem>>, vector<1x8x256xf32>
    %60 = vector.shape_cast %59 : vector<1x8x256xf32> to vector<8x256xf32>
    %61 = vector.shape_cast %58 : vector<8x256xf32> to vector<1x8x256xf32>
    tpu.vector_store %arg3[%c3_38, %c0_39, %c0_40], %61 {strides = array<i32>} : memref<8x8x256xf32, #tpu.memory_space<vmem>>, vector<1x8x256xf32>,
    %cst_41 = arith.constant 0.000000e+00 : f32
    %62 = vector.broadcast %cst_41 : f32 to vector<8x256xf32>
    %63 = arith.select %55, %62, %53 : vector<8x256xi1>, vector<8x256xf32>
    %cst_42 = arith.constant 2.500000e-01 : f32
    %64 = vector.broadcast %cst_42 : f32 to vector<8x256xf32>
    %65 = arith.mulf %64, %63 : vector<8x256xf32>
    %c4 = arith.constant 4 : index
    %c0_43 = arith.constant 0 : index
    %c0_44 = arith.constant 0 : index
    %66 = vector.load %arg2[%c4, %c0_43, %c0_44] : memref<8x8x256xf32, #tpu.memory_space<vmem>>, vector<1x8x256xf32>
    %67 = vector.shape_cast %66 : vector<1x8x256xf32> to vector<8x256xf32>
    %68 = arith.addf %65, %67 : vector<8x256xf32>
    %cst_45 = arith.constant 5.000000e-01 : f32
    %69 = vector.broadcast %cst_45 : f32 to vector<8x256xf32>
    %70 = arith.cmpf ogt, %68, %69 : vector<8x256xf32>
    %cst_46 = arith.constant 1.000000e+00 : f32
    %cst_47 = arith.constant 0.000000e+00 : f32
    %71 = vector.broadcast %cst_46 : f32 to vector<8x256xf32>
    %72 = vector.broadcast %cst_47 : f32 to vector<8x256xf32>
    %73 = arith.select %70, %71, %72 : vector<8x256xi1>, vector<8x256xf32>
    %c4_48 = arith.constant 4 : index
    %c0_49 = arith.constant 0 : index
    %c0_50 = arith.constant 0 : index
    %74 = vector.load %arg3[%c4_48, %c0_49, %c0_50] : memref<8x8x256xf32, #tpu.memory_space<vmem>>, vector<1x8x256xf32>
    %75 = vector.shape_cast %74 : vector<1x8x256xf32> to vector<8x256xf32>
    %76 = vector.shape_cast %73 : vector<8x256xf32> to vector<1x8x256xf32>
    tpu.vector_store %arg3[%c4_48, %c0_49, %c0_50], %76 {strides = array<i32>} : memref<8x8x256xf32, #tpu.memory_space<vmem>>, vector<1x8x256xf32>,
    %cst_51 = arith.constant 0.000000e+00 : f32
    %77 = vector.broadcast %cst_51 : f32 to vector<8x256xf32>
    %78 = arith.select %70, %77, %68 : vector<8x256xi1>, vector<8x256xf32>
    %cst_52 = arith.constant 2.500000e-01 : f32
    %79 = vector.broadcast %cst_52 : f32 to vector<8x256xf32>
    %80 = arith.mulf %79, %78 : vector<8x256xf32>
    %c5 = arith.constant 5 : index
    %c0_53 = arith.constant 0 : index
    %c0_54 = arith.constant 0 : index
    %81 = vector.load %arg2[%c5, %c0_53, %c0_54] : memref<8x8x256xf32, #tpu.memory_space<vmem>>, vector<1x8x256xf32>
    %82 = vector.shape_cast %81 : vector<1x8x256xf32> to vector<8x256xf32>
    %83 = arith.addf %80, %82 : vector<8x256xf32>
    %cst_55 = arith.constant 5.000000e-01 : f32
    %84 = vector.broadcast %cst_55 : f32 to vector<8x256xf32>
    %85 = arith.cmpf ogt, %83, %84 : vector<8x256xf32>
    %cst_56 = arith.constant 1.000000e+00 : f32
    %cst_57 = arith.constant 0.000000e+00 : f32
    %86 = vector.broadcast %cst_56 : f32 to vector<8x256xf32>
    %87 = vector.broadcast %cst_57 : f32 to vector<8x256xf32>
    %88 = arith.select %85, %86, %87 : vector<8x256xi1>, vector<8x256xf32>
    %c5_58 = arith.constant 5 : index
    %c0_59 = arith.constant 0 : index
    %c0_60 = arith.constant 0 : index
    %89 = vector.load %arg3[%c5_58, %c0_59, %c0_60] : memref<8x8x256xf32, #tpu.memory_space<vmem>>, vector<1x8x256xf32>
    %90 = vector.shape_cast %89 : vector<1x8x256xf32> to vector<8x256xf32>
    %91 = vector.shape_cast %88 : vector<8x256xf32> to vector<1x8x256xf32>
    tpu.vector_store %arg3[%c5_58, %c0_59, %c0_60], %91 {strides = array<i32>} : memref<8x8x256xf32, #tpu.memory_space<vmem>>, vector<1x8x256xf32>,
    %cst_61 = arith.constant 0.000000e+00 : f32
    %92 = vector.broadcast %cst_61 : f32 to vector<8x256xf32>
    %93 = arith.select %85, %92, %83 : vector<8x256xi1>, vector<8x256xf32>
    %cst_62 = arith.constant 2.500000e-01 : f32
    %94 = vector.broadcast %cst_62 : f32 to vector<8x256xf32>
    %95 = arith.mulf %94, %93 : vector<8x256xf32>
    %c6 = arith.constant 6 : index
    %c0_63 = arith.constant 0 : index
    %c0_64 = arith.constant 0 : index
    %96 = vector.load %arg2[%c6, %c0_63, %c0_64] : memref<8x8x256xf32, #tpu.memory_space<vmem>>, vector<1x8x256xf32>
    %97 = vector.shape_cast %96 : vector<1x8x256xf32> to vector<8x256xf32>
    %98 = arith.addf %95, %97 : vector<8x256xf32>
    %cst_65 = arith.constant 5.000000e-01 : f32
    %99 = vector.broadcast %cst_65 : f32 to vector<8x256xf32>
    %100 = arith.cmpf ogt, %98, %99 : vector<8x256xf32>
    %cst_66 = arith.constant 1.000000e+00 : f32
    %cst_67 = arith.constant 0.000000e+00 : f32
    %101 = vector.broadcast %cst_66 : f32 to vector<8x256xf32>
    %102 = vector.broadcast %cst_67 : f32 to vector<8x256xf32>
    %103 = arith.select %100, %101, %102 : vector<8x256xi1>, vector<8x256xf32>
    %c6_68 = arith.constant 6 : index
    %c0_69 = arith.constant 0 : index
    %c0_70 = arith.constant 0 : index
    %104 = vector.load %arg3[%c6_68, %c0_69, %c0_70] : memref<8x8x256xf32, #tpu.memory_space<vmem>>, vector<1x8x256xf32>
    %105 = vector.shape_cast %104 : vector<1x8x256xf32> to vector<8x256xf32>
    %106 = vector.shape_cast %103 : vector<8x256xf32> to vector<1x8x256xf32>
    tpu.vector_store %arg3[%c6_68, %c0_69, %c0_70], %106 {strides = array<i32>} : memref<8x8x256xf32, #tpu.memory_space<vmem>>, vector<1x8x256xf32>,
    %cst_71 = arith.constant 0.000000e+00 : f32
    %107 = vector.broadcast %cst_71 : f32 to vector<8x256xf32>
    %108 = arith.select %100, %107, %98 : vector<8x256xi1>, vector<8x256xf32>
    %cst_72 = arith.constant 2.500000e-01 : f32
    %109 = vector.broadcast %cst_72 : f32 to vector<8x256xf32>
    %110 = arith.mulf %109, %108 : vector<8x256xf32>
    %c7 = arith.constant 7 : index
    %c0_73 = arith.constant 0 : index
    %c0_74 = arith.constant 0 : index
    %111 = vector.load %arg2[%c7, %c0_73, %c0_74] : memref<8x8x256xf32, #tpu.memory_space<vmem>>, vector<1x8x256xf32>
    %112 = vector.shape_cast %111 : vector<1x8x256xf32> to vector<8x256xf32>
    %113 = arith.addf %110, %112 : vector<8x256xf32>
    %cst_75 = arith.constant 5.000000e-01 : f32
    %114 = vector.broadcast %cst_75 : f32 to vector<8x256xf32>
    %115 = arith.cmpf ogt, %113, %114 : vector<8x256xf32>
    %cst_76 = arith.constant 1.000000e+00 : f32
    %cst_77 = arith.constant 0.000000e+00 : f32
    %116 = vector.broadcast %cst_76 : f32 to vector<8x256xf32>
    %117 = vector.broadcast %cst_77 : f32 to vector<8x256xf32>
    %118 = arith.select %115, %116, %117 : vector<8x256xi1>, vector<8x256xf32>
    %c7_78 = arith.constant 7 : index
    %c0_79 = arith.constant 0 : index
    %c0_80 = arith.constant 0 : index
    %119 = vector.load %arg3[%c7_78, %c0_79, %c0_80] : memref<8x8x256xf32, #tpu.memory_space<vmem>>, vector<1x8x256xf32>
    %120 = vector.shape_cast %119 : vector<1x8x256xf32> to vector<8x256xf32>
    %121 = vector.shape_cast %118 : vector<8x256xf32> to vector<1x8x256xf32>
    tpu.vector_store %arg3[%c7_78, %c0_79, %c0_80], %121 {strides = array<i32>} : memref<8x8x256xf32, #tpu.memory_space<vmem>>, vector<1x8x256xf32>,
    %cst_81 = arith.constant 0.000000e+00 : f32
    %122 = vector.broadcast %cst_81 : f32 to vector<8x256xf32>
    %123 = arith.select %115, %122, %113 : vector<8x256xi1>, vector<8x256xf32>
    %c0_82 = arith.constant 0 : index
    %c0_83 = arith.constant 0 : index
    %124 = vector.load %arg4[%c0_82, %c0_83] : memref<8x256xf32, #tpu.memory_space<vmem>>, vector<8x256xf32>
    tpu.vector_store %arg4[%c0_82, %c0_83], %123 {strides = array<i32>} : memref<8x256xf32, #tpu.memory_space<vmem>>, vector<8x256xf32>,
    return
  }
  func.func @transform_0(%arg0: i32, %arg1: i32) -> (i32, i32, i32) {
    %c0_i32 = arith.constant 0 : i32
    %c0_i32_0 = arith.constant 0 : i32
    return %arg1, %arg0, %c0_i32 : i32, i32, i32
  }
  func.func @transform_1(%arg0: i32, %arg1: i32) -> (i32, i32, i32) {
    %c0_i32 = arith.constant 0 : i32
    %c0_i32_0 = arith.constant 0 : i32
    return %arg1, %arg0, %c0_i32 : i32, i32, i32
  }
}

</mosaic_0001>

<bundles_post_ra>
// kernel: tpu_custom_call.1
= control target key start
LH: loop header
LB: loop body
LE: loop exit
PB: predicated region body
PF: predicated region fallthrough
CT: control target
= control target key end

     0   :  { %6 = vsyncpa [#allocation4], 0  ;;  %s280_s0 = inlined_call_operand.hbm [shape: f32[8,8,256], index: 0, kind: input, shape index: {}]   ;;  %s281_s1 = inlined_call_operand.hbm [shape: f32[8,8,256], index: 1, kind: output, shape index: {}]  }
   0x1   :  { %7 = vsyncpa [#allocation5], 0  ;;  %s12_s8 = sshll.u32 %s280_s0, 4  ;;  %s237_s9 = smov [#allocation3]   ;;  %s13_s8 = int_to_ptr.hbm [resolvable:$true] %s12_s8 }
   0x2   :  { %s14_s10 = sshll.u32 %s237_s9, 4  ;;  %s238_s11 = smov 256   ;;  %s15_s10 = int_to_ptr.vmem [resolvable:$true] %s14_s10 }
   0x3   :  { %s239_s12 = smov 16  }
   0x4   :  { %20 = dma.hbm_to_vmem [thread:$0]  %s13_s8, 2048, %s15_s10, [#allocation4], %s238_s11, %s238_s11, %s239_s12  }
   0x5   :  { %233 = dma.done.wait [#allocation4], 2048  }
   0x6   :  { %234 = vsyncadd [#allocation4], 4294965248  ;;  %v35_v0 = vld [vmem:[#allocation3] sm:$0xff]  ;;  %v36_v1 = vld [vmem:[#allocation3 + $0x8] sm:$0xff]  ;;  %v240_v2 = vmov 0.0   ;;  %s241_s0 = smov [#allocation6]  }
   0x7   :  { %vm39_vm0 = vcmp.gt.f32.partialorder %v35_v0, 0.5  ;;  %vm40_vm1 = vcmp.gt.f32.partialorder %v36_v1, 0.5  ;;  %v50_v7 = vld [vmem:[#allocation3 + $0x10] sm:$0xff]  ;;  %v51_v8 = vld [vmem:[#allocation3 + $0x18] sm:$0xff]  ;;  %v66_v17 = vld [vmem:[#allocation3 + $0x20] sm:$0xff]  ;;  %s165_s13 = sshll.u32 %s241_s0, 4  ;;  %s166_s13 = int_to_ptr.vmem [resolvable:$true] %s165_s13 }
   0x8   :  { %v41_v3 = vsel %vm39_vm0, 1.0, %v240_v2  ;;  %v45_v4 = vsel %vm39_vm0, 0.0, %v35_v0  ;;  %v42_v5 = vsel %vm40_vm1, 1.0, %v240_v2  ;;  %v46_v6 = vsel %vm40_vm1, 0.0, %v36_v1  ;;  %v67_v18 = vld [vmem:[#allocation3 + $0x28] sm:$0xff]  ;;  %v82_v27 = vld [vmem:[#allocation3 + $0x30] sm:$0xff] }
   0x9   :  { %43 = vst [vmem:[#allocation6] sm:$0xff] %v41_v3  ;;  %v47_v9 = vmul.f32 0.25, %v45_v4  ;;  %v48_v10 = vmul.f32 0.25, %v46_v6  ;;  %v83_v28 = vld [vmem:[#allocation3 + $0x38] sm:$0xff]  ;;  %v98_v37 = vld [vmem:[#allocation3 + $0x40] sm:$0xff]  ;;  %v99_v38 = vld [vmem:[#allocation3 + $0x48] sm:$0xff] }
   0xa   :  { %44 = vst [vmem:[#allocation6 + $0x8] sm:$0xff] %v42_v5  ;;  %v114_v47 = vld [vmem:[#allocation3 + $0x50] sm:$0xff]  ;;  %v115_v48 = vld [vmem:[#allocation3 + $0x58] sm:$0xff]  ;;  %v130_v57 = vld [vmem:[#allocation3 + $0x60] sm:$0xff]  ;;  %s167_s16 = sshll.u32 %s281_s1, 4  ;;  %s168_s16 = int_to_ptr.hbm [resolvable:$true] %s167_s16 }
   0xb   :  { %v52_v11 = vadd.f32 %v50_v7, %v47_v9  ;;  %v53_v12 = vadd.f32 %v51_v8, %v48_v10  ;;  %v131_v58 = vld [vmem:[#allocation3 + $0x68] sm:$0xff]  ;;  %v146_v4 = vld [vmem:[#allocation3 + $0x70] sm:$0xff]  ;;  %v147_v5 = vld [vmem:[#allocation3 + $0x78] sm:$0xff] }
   0xd   :  { %vm54_vm2 = vcmp.gt.f32.partialorder %v52_v11, 0.5  ;;  %vm55_vm3 = vcmp.gt.f32.partialorder %v53_v12, 0.5 }
   0xe   :  { %v56_v13 = vsel %vm54_vm2, 1.0, %v240_v2  ;;  %v61_v14 = vsel %vm54_vm2, 0.0, %v52_v11  ;;  %v57_v15 = vsel %vm55_vm3, 1.0, %v240_v2  ;;  %v62_v16 = vsel %vm55_vm3, 0.0, %v53_v12 }
   0xf   :  { %59 = vst [vmem:[#allocation6 + $0x10] sm:$0xff] %v56_v13  ;;  %v63_v19 = vmul.f32 0.25, %v61_v14  ;;  %v64_v20 = vmul.f32 0.25, %v62_v16 }
  0x10   :  { %60 = vst [vmem:[#allocation6 + $0x18] sm:$0xff] %v57_v15 }
  0x11   :  { %v68_v21 = vadd.f32 %v66_v17, %v63_v19  ;;  %v69_v22 = vadd.f32 %v67_v18, %v64_v20 }
  0x13   :  { %vm70_vm4 = vcmp.gt.f32.partialorder %v68_v21, 0.5  ;;  %vm71_vm5 = vcmp.gt.f32.partialorder %v69_v22, 0.5 }
  0x14   :  { %v72_v23 = vsel %vm70_vm4, 1.0, %v240_v2  ;;  %v77_v24 = vsel %vm70_vm4, 0.0, %v68_v21  ;;  %v73_v25 = vsel %vm71_vm5, 1.0, %v240_v2  ;;  %v78_v26 = vsel %vm71_vm5, 0.0, %v69_v22 }
  0x15   :  { %75 = vst [vmem:[#allocation6 + $0x20] sm:$0xff] %v72_v23  ;;  %v79_v29 = vmul.f32 0.25, %v77_v24  ;;  %v80_v30 = vmul.f32 0.25, %v78_v26 }
  0x16   :  { %76 = vst [vmem:[#allocation6 + $0x28] sm:$0xff] %v73_v25 }
  0x17   :  { %v84_v31 = vadd.f32 %v82_v27, %v79_v29  ;;  %v85_v32 = vadd.f32 %v83_v28, %v80_v30 }
  0x19   :  { %vm86_vm6 = vcmp.gt.f32.partialorder %v84_v31, 0.5  ;;  %vm87_vm7 = vcmp.gt.f32.partialorder %v85_v32, 0.5 }
  0x1a   :  { %v88_v33 = vsel %vm86_vm6, 1.0, %v240_v2  ;;  %v93_v34 = vsel %vm86_vm6, 0.0, %v84_v31  ;;  %v89_v35 = vsel %vm87_vm7, 1.0, %v240_v2  ;;  %v94_v36 = vsel %vm87_vm7, 0.0, %v85_v32 }
  0x1b   :  { %91 = vst [vmem:[#allocation6 + $0x30] sm:$0xff] %v88_v33  ;;  %v95_v39 = vmul.f32 0.25, %v93_v34  ;;  %v96_v40 = vmul.f32 0.25, %v94_v36 }
  0x1c   :  { %92 = vst [vmem:[#allocation6 + $0x38] sm:$0xff] %v89_v35 }
  0x1d   :  { %v100_v41 = vadd.f32 %v98_v37, %v95_v39  ;;  %v101_v42 = vadd.f32 %v99_v38, %v96_v40 }
  0x1f   :  { %vm102_vm8 = vcmp.gt.f32.partialorder %v100_v41, 0.5  ;;  %vm103_vm9 = vcmp.gt.f32.partialorder %v101_v42, 0.5 }
  0x20   :  { %v104_v43 = vsel %vm102_vm8, 1.0, %v240_v2  ;;  %v109_v44 = vsel %vm102_vm8, 0.0, %v100_v41  ;;  %v105_v45 = vsel %vm103_vm9, 1.0, %v240_v2  ;;  %v110_v46 = vsel %vm103_vm9, 0.0, %v101_v42 }
  0x21   :  { %107 = vst [vmem:[#allocation6 + $0x40] sm:$0xff] %v104_v43  ;;  %v111_v49 = vmul.f32 0.25, %v109_v44  ;;  %v112_v50 = vmul.f32 0.25, %v110_v46 }
  0x22   :  { %108 = vst [vmem:[#allocation6 + $0x48] sm:$0xff] %v105_v45 }
  0x23   :  { %v116_v51 = vadd.f32 %v114_v47, %v111_v49  ;;  %v117_v52 = vadd.f32 %v115_v48, %v112_v50 }
  0x25   :  { %vm118_vm10 = vcmp.gt.f32.partialorder %v116_v51, 0.5  ;;  %vm119_vm11 = vcmp.gt.f32.partialorder %v117_v52, 0.5 }
  0x26   :  { %v120_v53 = vsel %vm118_vm10, 1.0, %v240_v2  ;;  %v125_v54 = vsel %vm118_vm10, 0.0, %v116_v51  ;;  %v121_v55 = vsel %vm119_vm11, 1.0, %v240_v2  ;;  %v126_v56 = vsel %vm119_vm11, 0.0, %v117_v52 }
  0x27   :  { %123 = vst [vmem:[#allocation6 + $0x50] sm:$0xff] %v120_v53  ;;  %v127_v59 = vmul.f32 0.25, %v125_v54  ;;  %v128_v60 = vmul.f32 0.25, %v126_v56 }
  0x28   :  { %124 = vst [vmem:[#allocation6 + $0x58] sm:$0xff] %v121_v55 }
  0x29   :  { %v132_v61 = vadd.f32 %v130_v57, %v127_v59  ;;  %v133_v62 = vadd.f32 %v131_v58, %v128_v60 }
  0x2b   :  { %vm134_vm12 = vcmp.gt.f32.partialorder %v132_v61, 0.5  ;;  %vm135_vm13 = vcmp.gt.f32.partialorder %v133_v62, 0.5 }
  0x2c   :  { %v136_v63 = vsel %vm134_vm12, 1.0, %v240_v2  ;;  %v141_v0 = vsel %vm134_vm12, 0.0, %v132_v61  ;;  %v137_v1 = vsel %vm135_vm13, 1.0, %v240_v2  ;;  %v142_v3 = vsel %vm135_vm13, 0.0, %v133_v62 }
  0x2d   :  { %139 = vst [vmem:[#allocation6 + $0x60] sm:$0xff] %v136_v63  ;;  %v143_v6 = vmul.f32 0.25, %v141_v0  ;;  %v144_v7 = vmul.f32 0.25, %v142_v3 }
  0x2e   :  { %140 = vst [vmem:[#allocation6 + $0x68] sm:$0xff] %v137_v1 }
  0x2f   :  { %v148_v8 = vadd.f32 %v146_v4, %v143_v6  ;;  %v149_v9 = vadd.f32 %v147_v5, %v144_v7 }
  0x31   :  { %vm150_vm14 = vcmp.gt.f32.partialorder %v148_v8, 0.5  ;;  %vm151_vm15 = vcmp.gt.f32.partialorder %v149_v9, 0.5 }
  0x32   :  { %v152_v10 = vsel %vm150_vm14, 1.0, %v240_v2  ;;  %v153_v11 = vsel %vm151_vm15, 1.0, %v240_v2 }
  0x33   :  { %155 = vst [vmem:[#allocation6 + $0x70] sm:$0xff] %v152_v10 }
  0x34   :  { %156 = vst [vmem:[#allocation6 + $0x78] sm:$0xff] %v153_v11 }
  0x35   :  { %173 = dma.vmem_to_hbm [thread:$0]  %s166_s13, 2048, %s168_s16, [#allocation5], %s238_s11, %s238_s11, %s239_s12  }
  0x36   :  { %235 = dma.done.wait [#allocation5], 2048  }
  0x37   :  { %236 = vsyncadd [#allocation5], 4294965248 }
  0x38   :  { %178 = vsyncpa [#allocation4], 1 }
  0x39   :  { %179 = vsyncpa [#allocation5], 1 }

</bundles_post_ra>
